<compile_context>
chip_gen: v6e
topology: v6e:2x2x1
jax: 0.10.0
libtpu: 0.0.40
codegen_flags: <defaults>
</compile_context>

<pallas_src>
import functools

import jax
import jax.numpy as jnp
from jax.experimental import pallas as pl
from jax.experimental.pallas import tpu as pltpu

LANE = 128
HIDDEN = 256


def _round_up(n, m):
    return ((n + m - 1) // m) * m


def _pick_tm(batch):
    """Batch tile size (static, shape-derived).

    Small B: one (near-)exact tile, multiple of 16 (bf16 sublane pack).
    Large B: 256-1024 row tiles so the grid has >=2 steps (v7x megacore) and
    DMA transfers are pipeline-sized; VMEM stays <4 MiB on every generation.
    """
    small = _round_up(max(batch, 8), 16)
    if small <= 256:
        return small
    for tm in (1024, 512, 256):
        if pl.cdiv(batch, tm) >= 2:
            return tm
    return 256


def dqn_mlp_kernel(x_ref, w1_ref, b1_ref, w2_ref, b2_ref, w3_ref, b3_ref,
                   out_ref, *, n_split):
    # x_ref: (tm, S) f32 | w*: bf16 | b*: f32 | out_ref: (tm, N3P) f32/bf16
    w1 = w1_ref[...]
    b1 = b1_ref[...]
    w2 = w2_ref[...]
    b2 = b2_ref[...]
    w3 = w3_ref[...]
    b3 = b3_ref[...]

    rows = x_ref.shape[0] // n_split
    # Independent row sub-chunks: lets the scheduler overlap one chunk's VPU
    # epilogue with the other chunk's MXU work (mainly a v5e win; harmless
    # elsewhere).  Row chunks are independent, so this is exactly equivalent.
    for c in range(n_split):
        rsl = pl.ds(c * rows, rows)
        x = x_ref[rsl, :].astype(jnp.bfloat16)             # cast fused in-kernel
        h1 = jnp.dot(x, w1, preferred_element_type=jnp.float32) + b1
        h1 = jnp.maximum(h1, 0.0)
        h2 = jnp.dot(h1.astype(jnp.bfloat16), w2,
                     preferred_element_type=jnp.float32) + b2
        h2 = jnp.maximum(h2, 0.0)
        y = jnp.dot(h2.astype(jnp.bfloat16), w3,
                    preferred_element_type=jnp.float32) + b3
        out_ref[rsl, :] = y.astype(out_ref.dtype)


@functools.partial(jax.jit, static_argnames=("action_dim", "out_dtype"))
def dqn_forward(x, padded_params, *, action_dim, out_dtype=jnp.float32):
    """x: (B, state_dim) f32.  Returns (B, action_dim) Q-values.

    out_dtype: keep f32 (default) when Q-values feed TD-target math; pass
    jnp.bfloat16 to halve the dominant output HBM stream if only argmax /
    greedy action selection follows.
    """
    w1, b1, w2, b2, w3, b3 = padded_params
    B, S = x.shape
    H = w1.shape[1]
    N3P = w3.shape[1]

    tm = _pick_tm(B)                       # static at trace time
    n_split = 2 if tm >= 32 else 1
    grid = (pl.cdiv(B, tm),)               # partial last tile handled by Pallas
    # TODO(synk): if state_dim or the padded action_dim ever grow beyond what a
    # single VMEM block can hold, a K-loop / N-tiling with an accumulator is
    # needed; for DQN-sized dims a single block is correct and fastest.

    out = pl.pallas_call(
        functools.partial(dqn_mlp_kernel, n_split=n_split),
        out_shape=jax.ShapeDtypeStruct((B, N3P), out_dtype),
        grid=grid,
        in_specs=[
            pl.BlockSpec((tm, S), lambda i: (i, 0)),    # x: batch-tiled, f32, unpadded
            pl.BlockSpec((S, H), lambda i: (0, 0)),     # w1: resident (no K padding)
            pl.BlockSpec((1, H), lambda i: (0, 0)),     # b1: resident
            pl.BlockSpec((H, H), lambda i: (0, 0)),     # w2: resident
            pl.BlockSpec((1, H), lambda i: (0, 0)),     # b2: resident
            pl.BlockSpec((H, N3P), lambda i: (0, 0)),   # w3: resident, N padded to 128
            pl.BlockSpec((1, N3P), lambda i: (0, 0)),   # b3: resident, N padded to 128
        ],
        out_specs=pl.BlockSpec((tm, N3P), lambda i: (i, 0)),  # lane-dense store
        compiler_params=pltpu.CompilerParams(
            dimension_semantics=("parallel",)),
    )(x, w1, b1, w2, b2, w3, b3)
    return out[:, :action_dim]


def init_params(key, state_dim, action_dim, hidden=HIDDEN):
    # Deterministic synthetic init (PyTorch-style uniform fan-in bounds), f32,
    # weights stored [in, out] so the kernel computes y = x @ W + b.
    ks = jax.random.split(key, 6)

    def lin_init(kw, kb, fan_in, fan_out):
        bound = 1.0 / jnp.sqrt(jnp.float32(fan_in))
        w = jax.random.uniform(kw, (fan_in, fan_out), jnp.float32, -bound, bound)
        b = jax.random.uniform(kb, (1, fan_out), jnp.float32, -bound, bound)
        return w, b

    w1, b1 = lin_init(ks[0], ks[1], state_dim, hidden)
    w2, b2 = lin_init(ks[2], ks[3], hidden, hidden)
    w3, b3 = lin_init(ks[4], ks[5], hidden, action_dim)
    return (w1, b1, w2, b2, w3, b3)


def prepare_params(params):
    """One-time prep: cast weights to bf16 (native MXU path, half the weight
    DMA bytes), keep biases f32 (added to the f32 accumulator), and zero-pad
    ONLY the final N (action_dim) to 128 lanes for an unmasked lane-dense
    output store.  state_dim (K of matmul 1) is no longer padded."""
    w1, b1, w2, b2, w3, b3 = params
    n3p = _round_up(w3.shape[1], LANE)
    w3p = jnp.zeros((w3.shape[0], n3p), jnp.bfloat16).at[:, : w3.shape[1]].set(
        w3.astype(jnp.bfloat16))
    b3p = jnp.zeros((1, n3p), jnp.float32).at[:, : b3.shape[1]].set(b3)
    return (w1.astype(jnp.bfloat16), b1, w2.astype(jnp.bfloat16), b2, w3p, b3p)


def reference_forward(x, params):
    w1, b1, w2, b2, w3, b3 = params
    h1 = jnp.maximum(x @ w1 + b1, 0.0)
    h2 = jnp.maximum(h1 @ w2 + b2, 0.0)
    return h2 @ w3 + b3


if __name__ == "__main__":
    key = jax.random.PRNGKey(0)
    k_x, k_p = jax.random.split(key)

    batch, state_dim, action_dim = 8, 16, 4
    x = jax.random.normal(k_x, (batch, state_dim), dtype=jnp.float32)
    params = init_params(k_p, state_dim, action_dim)
    padded_params = prepare_params(params)

    out = dqn_forward(x, padded_params, action_dim=action_dim)
    out = jax.block_until_ready(out)

    ref = reference_forward(x, params)
    assert out.shape == (batch, action_dim)
    # bf16 MXU inputs with f32 accumulation: compare against the pure-f32
    # reference with a bf16-appropriate tolerance.
    err = jnp.max(jnp.abs(out - ref))
    assert jnp.allclose(out, ref, atol=3e-2, rtol=3e-2), f"mismatch, max abs err={err}"

    print("KERNEL_OK")
</pallas_src>

<mosaic_0001>
module attributes {stable_mosaic.version = 11 : i64} {
  func.func @dqn_mlp_kernel(%arg0: i32, %arg1: memref<16x16xf32, #tpu.memory_space<vmem>>, %arg2: memref<16x256xbf16, #tpu.memory_space<vmem>>, %arg3: memref<1x256xf32, #tpu.memory_space<vmem>>, %arg4: memref<256x256xbf16, #tpu.memory_space<vmem>>, %arg5: memref<1x256xf32, #tpu.memory_space<vmem>>, %arg6: memref<256x128xbf16, #tpu.memory_space<vmem>>, %arg7: memref<1x128xf32, #tpu.memory_space<vmem>>, %arg8: memref<16x128xf32, #tpu.memory_space<vmem>>) attributes {dimension_semantics = [#tpu.dimension_semantics<parallel>], iteration_bounds = array<i64: 1>, scalar_prefetch = 0 : i64, scratch_operands = 0 : i64, tpu.core_type = #tpu.core_type<tc>, window_params = [{transform_indices = @transform_0, window_bounds = array<i64: 16, 16>}, {pipeline_mode = #tpu.pipeline_mode<synchronous>, transform_indices = @transform_1, window_bounds = array<i64: 16, 256>}, {pipeline_mode = #tpu.pipeline_mode<synchronous>, transform_indices = @transform_2, window_bounds = array<i64: 1, 256>}, {pipeline_mode = #tpu.pipeline_mode<synchronous>, transform_indices = @transform_3, window_bounds = array<i64: 256, 256>}, {pipeline_mode = #tpu.pipeline_mode<synchronous>, transform_indices = @transform_4, window_bounds = array<i64: 1, 256>}, {pipeline_mode = #tpu.pipeline_mode<synchronous>, transform_indices = @transform_5, window_bounds = array<i64: 256, 128>}, {pipeline_mode = #tpu.pipeline_mode<synchronous>, transform_indices = @transform_6, window_bounds = array<i64: 1, 128>}, {transform_indices = @transform_7, window_bounds = array<i64: 16, 128>}]} {
    %c0 = arith.constant 0 : index
    %c0_0 = arith.constant 0 : index
    %0 = vector.load %arg2[%c0, %c0_0] : memref<16x256xbf16, #tpu.memory_space<vmem>>, vector<16x256xbf16>
    %c0_1 = arith.constant 0 : index
    %c0_2 = arith.constant 0 : index
    %1 = vector.load %arg3[%c0_1, %c0_2] : memref<1x256xf32, #tpu.memory_space<vmem>>, vector<1x256xf32>
    %c0_3 = arith.constant 0 : index
    %c0_4 = arith.constant 0 : index
    %2 = vector.load %arg4[%c0_3, %c0_4] : memref<256x256xbf16, #tpu.memory_space<vmem>>, vector<256x256xbf16>
    %c0_5 = arith.constant 0 : index
    %c0_6 = arith.constant 0 : index
    %3 = vector.load %arg5[%c0_5, %c0_6] : memref<1x256xf32, #tpu.memory_space<vmem>>, vector<1x256xf32>
    %c0_7 = arith.constant 0 : index
    %c0_8 = arith.constant 0 : index
    %4 = vector.load %arg6[%c0_7, %c0_8] : memref<256x128xbf16, #tpu.memory_space<vmem>>, vector<256x128xbf16>
    %c0_9 = arith.constant 0 : index
    %c0_10 = arith.constant 0 : index
    %5 = vector.load %arg7[%c0_9, %c0_10] : memref<1x128xf32, #tpu.memory_space<vmem>>, vector<1x128xf32>
    %c0_11 = arith.constant 0 : index
    %c0_12 = arith.constant 0 : index
    %6 = vector.load %arg1[%c0_11, %c0_12] : memref<16x16xf32, #tpu.memory_space<vmem>>, vector<16x16xf32>
    %7 = arith.truncf %6 : vector<16x16xf32> to vector<16x16xbf16>
    %cst = arith.constant dense<0.000000e+00> : vector<16x256xf32>
    %8 = tpu.matmul %7, %0, %cst {dimension_numbers = #tpu.dot_dimension_numbers<[1], [0], [0], [1], [0, 0, 1, 1], [], []>} : vector<16x16xbf16>, vector<16x256xbf16>, vector<16x256xf32> -> vector<16x256xf32>
    %9 = vector.broadcast %1 : vector<1x256xf32> to vector<16x256xf32>
    %10 = arith.addf %8, %9 : vector<16x256xf32>
    %cst_13 = arith.constant 0.000000e+00 : f32
    %11 = vector.broadcast %cst_13 : f32 to vector<16x256xf32>
    %12 = arith.maximumf %10, %11 : vector<16x256xf32>
    %13 = arith.truncf %12 : vector<16x256xf32> to vector<16x256xbf16>
    %cst_14 = arith.constant dense<0.000000e+00> : vector<16x256xf32>
    %14 = tpu.matmul %13, %2, %cst_14 {dimension_numbers = #tpu.dot_dimension_numbers<[1], [0], [0], [1], [0, 0, 1, 1], [], []>} : vector<16x256xbf16>, vector<256x256xbf16>, vector<16x256xf32> -> vector<16x256xf32>
    %15 = vector.broadcast %3 : vector<1x256xf32> to vector<16x256xf32>
    %16 = arith.addf %14, %15 : vector<16x256xf32>
    %cst_15 = arith.constant 0.000000e+00 : f32
    %17 = vector.broadcast %cst_15 : f32 to vector<16x256xf32>
    %18 = arith.maximumf %16, %17 : vector<16x256xf32>
    %19 = arith.truncf %18 : vector<16x256xf32> to vector<16x256xbf16>
    %cst_16 = arith.constant dense<0.000000e+00> : vector<16x128xf32>
    %20 = tpu.matmul %19, %4, %cst_16 {dimension_numbers = #tpu.dot_dimension_numbers<[1], [0], [0], [1], [0, 0, 1, 1], [], []>} : vector<16x256xbf16>, vector<256x128xbf16>, vector<16x128xf32> -> vector<16x128xf32>
    %21 = vector.broadcast %5 : vector<1x128xf32> to vector<16x128xf32>
    %22 = arith.addf %20, %21 : vector<16x128xf32>
    %c0_17 = arith.constant 0 : index
    %c0_18 = arith.constant 0 : index
    %23 = vector.load %arg8[%c0_17, %c0_18] : memref<16x128xf32, #tpu.memory_space<vmem>>, vector<16x128xf32>
    tpu.vector_store %arg8[%c0_17, %c0_18], %22 {strides = array<i32>} : memref<16x128xf32, #tpu.memory_space<vmem>>, vector<16x128xf32>,
    return
  }
  func.func @transform_0(%arg0: i32) -> (i32, i32) {
    %c0_i32 = arith.constant 0 : i32
    %c0_i32_0 = arith.constant 0 : i32
    return %arg0, %c0_i32 : i32, i32
  }
  func.func @transform_1(%arg0: i32) -> (i32, i32) {
    %c0_i32 = arith.constant 0 : i32
    %c0_i32_0 = arith.constant 0 : i32
    %c0_i32_1 = arith.constant 0 : i32
    return %c0_i32, %c0_i32_0 : i32, i32
  }
  func.func @transform_2(%arg0: i32) -> (i32, i32) {
    %c0_i32 = arith.constant 0 : i32
    %c0_i32_0 = arith.constant 0 : i32
    %c0_i32_1 = arith.constant 0 : i32
    return %c0_i32, %c0_i32_0 : i32, i32
  }
  func.func @transform_3(%arg0: i32) -> (i32, i32) {
    %c0_i32 = arith.constant 0 : i32
    %c0_i32_0 = arith.constant 0 : i32
    %c0_i32_1 = arith.constant 0 : i32
    return %c0_i32, %c0_i32_0 : i32, i32
  }
  func.func @transform_4(%arg0: i32) -> (i32, i32) {
    %c0_i32 = arith.constant 0 : i32
    %c0_i32_0 = arith.constant 0 : i32
    %c0_i32_1 = arith.constant 0 : i32
    return %c0_i32, %c0_i32_0 : i32, i32
  }
  func.func @transform_5(%arg0: i32) -> (i32, i32) {
    %c0_i32 = arith.constant 0 : i32
    %c0_i32_0 = arith.constant 0 : i32
    %c0_i32_1 = arith.constant 0 : i32
    return %c0_i32, %c0_i32_0 : i32, i32
  }
  func.func @transform_6(%arg0: i32) -> (i32, i32) {
    %c0_i32 = arith.constant 0 : i32
    %c0_i32_0 = arith.constant 0 : i32
    %c0_i32_1 = arith.constant 0 : i32
    return %c0_i32, %c0_i32_0 : i32, i32
  }
  func.func @transform_7(%arg0: i32) -> (i32, i32) {
    %c0_i32 = arith.constant 0 : i32
    %c0_i32_0 = arith.constant 0 : i32
    return %arg0, %c0_i32 : i32, i32
  }
}

</mosaic_0001>

<bundles_post_ra>
// kernel: dqn_forward.1
= control target key start
LH: loop header
LB: loop body
LE: loop exit
PB: predicated region body
PF: predicated region fallthrough
CT: control target
= control target key end

     0   :  { %12 = vsyncpa [#allocation3], 0  ;;  %s946_s0 = inlined_call_operand.hbm [shape: f32[8,16], index: 0, kind: input, shape index: {}]   ;;  %s947_s1 = inlined_call_operand.hbm [shape: bf16[16,256], index: 1, kind: input, shape index: {}]   ;;  %s948_s2 = inlined_call_operand.vmem [shape: f32[1,256], index: 2, kind: input, shape index: {}]   ;;  %s949_s3 = inlined_call_operand.hbm [shape: bf16[256,256], index: 3, kind: input, shape index: {}]   ;;  %s950_s4 = inlined_call_operand.vmem [shape: f32[1,256], index: 4, kind: input, shape index: {}]   ;;  %s951_s5 = inlined_call_operand.hbm [shape: bf16[256,128], index: 5, kind: input, shape index: {}]   ;;  %s952_s6 = inlined_call_operand.vmem [shape: f32[1,128], index: 6, kind: input, shape index: {}]   ;;  %s953_s7 = inlined_call_operand.vmem [shape: f32[8,128], index: 7, kind: output, shape index: {}]  }
   0x1   :  { %13 = vsyncpa [#allocation5], 0 }
   0x2   :  { %14 = vsyncpa [#allocation8], 0 }
   0x3   :  { %19 = vsyncadd [#allocation3], 128  ;;  %s873_s24 = smov [#allocation4]   ;;  %s874_s26 = smov [#allocation2]  }
   0x4   :  { %s32_s25 = sshll.u32 %s873_s24, 4  ;;  %s20_s27 = sshll.u32 %s874_s26, 4  ;;  %s33_s25 = int_to_ptr.vmem [resolvable:$true] %s32_s25  ;;  %s21_s27 = int_to_ptr.vmem [resolvable:$true] %s20_s27 }
   0x5   :  { %s795_s28 = scalar_lea.vmem %s33_s25, 256  ;;  %p800_p1 = scmp.lt.s32.totalorder %s33_s25, %s33_s25 }
   0x6   :  { %p796_p0 = scmp.ne.s32.totalorder %s33_s25, %s795_s28  ;;  %p801_p2 = scmp.lt.s32.totalorder %s795_s28, %s795_s28 }
   0x8   :  { %p802_p3 = por %p801_p2, %p800_p1 }
   0xa   :  { %p803_p4 = pnand %p802_p3, %p796_p0 }
   0xc   :  { %806 = shalt.err (!%p803_p4)
}
   0xd   :  { %s875_s29 = smov 128   ;;  %s876_s30 = smov 8  }
   0xe   :  { %38 = dma.hbm_to_vmem [thread:$0]  %s947_s1, 256, %s33_s25, [#allocation5], %s875_s29, %s875_s29, %s876_s30  }
   0xf   :  { %s815_s10 = scalar_lea.vmem %s21_s27, 128  ;;  %s819_s11 = scalar_lea.vmem %s21_s27, 256 }
  0x10   :  { %p816_p5 = scmp.ne.s32.totalorder %s21_s27, %s815_s10  ;;  %p820_p6 = scmp.lt.s32.totalorder %s21_s27, %s21_s27 }
  0x11   :  { %p821_p7 = scmp.lt.s32.totalorder %s819_s11, %s815_s10 }
  0x13   :  { %p822_p8 = por %p821_p7, %p820_p6 }
  0x15   :  { %p823_p9 = pnand %p822_p8, %p816_p5 }
  0x17   :  { %826 = shalt.err (!%p823_p9)
}
  0x18   :  { %26 = dma.hbm_to_vmem [thread:$0]  %s946_s0, 128, %s21_s27, [#allocation3], %s875_s29, %s875_s29, %s876_s30  }
  0x19   :  { %s877_s14 = smov [#allocation6]   ;;  %s878_s16 = smov [#allocation7]  }
  0x1a   :  { %s46_s15 = sshll.u32 %s877_s14, 4  ;;  %s60_s17 = sshll.u32 %s878_s16, 4  ;;  %s47_s15 = int_to_ptr.vmem [resolvable:$true] %s46_s15  ;;  %s61_s17 = int_to_ptr.vmem [resolvable:$true] %s60_s17 }
  0x1b   :  { %s835_s18 = scalar_lea.vmem %s47_s15, 4096  ;;  %p840_p11 = scmp.lt.s32.totalorder %s47_s15, %s47_s15 }
  0x1c   :  { %p836_p10 = scmp.ne.s32.totalorder %s47_s15, %s835_s18  ;;  %p841_p12 = scmp.lt.s32.totalorder %s835_s18, %s835_s18 }
  0x1e   :  { %p842_p13 = por %p841_p12, %p840_p11 }
  0x20   :  { %p843_p0 = pnand %p842_p13, %p836_p10 }
  0x22   :  { %846 = shalt.err (!%p843_p0)
}
  0x23   :  { %52 = dma.hbm_to_vmem [thread:$0]  %s949_s3, 4096, %s47_s15, [#allocation5], %s875_s29, %s875_s29, %s876_s30  }
  0x24   :  { %s855_s20 = scalar_lea.vmem %s61_s17, 2048  ;;  %p860_p2 = scmp.lt.s32.totalorder %s61_s17, %s61_s17 }
  0x25   :  { %p856_p1 = scmp.ne.s32.totalorder %s61_s17, %s855_s20  ;;  %p861_p3 = scmp.lt.s32.totalorder %s855_s20, %s855_s20 }
  0x27   :  { %p862_p4 = por %p861_p3, %p860_p2 }
  0x29   :  { %p863_p5 = pnand %p862_p4, %p856_p1 }
  0x2b   :  { %866 = shalt.err (!%p863_p5)
}
  0x2c   :  { %s879_s0 = smov 64   ;;  %s880_s21 = smov 4  }
  0x2d   :  { %66 = dma.hbm_to_vmem [thread:$0]  %s951_s5, 2048, %s61_s17, [#allocation8], %s879_s0, %s879_s0, %s880_s21  }
  0x2e   :  { %867 = dma.done.wait [#allocation3], 256  }
  0x2f   :  { %868 = vsyncadd [#allocation3], 4294967040 }
  0x30   :  { %869 = dma.done.wait [#allocation5], 4352  }
  0x31   :  { %870 = vsyncadd [#allocation5], 4294962944 }
  0x32   :  { %871 = dma.done.wait [#allocation8], 2048  }
  0x33   :  { %872 = vsyncadd [#allocation8], 4294965248  ;;  %v881_v0 = vmov 0   ;;  %v720_v1 = vld [vmem:[#allocation4 + $0x4] ss:$8 sps:$4 sm:$0xff]   ;;  %v151_v3 = vld [vmem:[#allocation2] sm:$0xff]  ;;  %v155_v48 = vlaneseq }
  0x34   :  { %211 = vmatprep.mubr.bf16.mxu0 %v881_v0  ;;  %v722_v2 = vld [vmem:[#allocation4] ss:$8 sps:$4 sm:$0xff]   ;;  %v152_v4 = vld [vmem:[#allocation2 + $0x8] sm:$0xff]  ;;  %193 = vmatprep.subr.bf16.mxu0 %v720_v1  ;;  %v723_v6 = vld [vmem:[#allocation6 + $0x74] ss:$8 sps:$4 sm:$0xff]   ;;  %vm175_vm0 = vcmask 130048  }
  0x35   :  { %v153_v5 = vpack.c.bf16 %v152_v4, %v151_v3  ;;  %194 = vmatpush1.bf16.msra.mxu0 %v722_v2  ;;  %v725_v7 = vld [vmem:[#allocation6 + $0x70] ss:$8 sps:$4 sm:$0xff]   ;;  %399 = vmatprep.subr.bf16.mxu1 %v723_v6  ;;  %v726_v8 = vld [vmem:[#allocation6 + $0x64] ss:$8 sps:$4 sm:$0xff]   ;;  %v728_v9 = vld [vmem:[#allocation6 + $0x60] ss:$8 sps:$4 sm:$0xff]  }
  0x36   :  { %400 = vmatpush1.bf16.msra.mxu1 %v725_v7  ;;  %v729_v10 = vld [vmem:[#allocation6 + $0x54] ss:$8 sps:$4 sm:$0xff]   ;;  %v731_v11 = vld [vmem:[#allocation6 + $0x50] ss:$8 sps:$4 sm:$0xff]   ;;  %v732_v12 = vld [vmem:[#allocation6 + $0x44] ss:$8 sps:$4 sm:$0xff]  }
  0x37   :  { %401 = vmatprep.subr.bf16.mxu1 %v726_v8  ;;  %v734_v13 = vld [vmem:[#allocation6 + $0x40] ss:$8 sps:$4 sm:$0xff]   ;;  %v735_v14 = vld [vmem:[#allocation6 + $0x34] ss:$8 sps:$4 sm:$0xff]   ;;  %v737_v15 = vld [vmem:[#allocation6 + $0x30] ss:$8 sps:$4 sm:$0xff]  }
  0x38   :  { %639 = vmatmul.mubr.msk.bf16.vlgmr.msra.gmra.mxu0 %vm175_vm0, %v153_v5  ;;  %v738_v16 = vld [vmem:[#allocation6 + $0x24] ss:$8 sps:$4 sm:$0xff]   ;;  %v740_v17 = vld [vmem:[#allocation6 + $0x20] ss:$8 sps:$4 sm:$0xff]   ;;  %v741_v18 = vld [vmem:[#allocation6 + $0x14] ss:$8 sps:$4 sm:$0xff]  }
  0x39   :  { %v743_v19 = vld [vmem:[#allocation6 + $0x10] ss:$8 sps:$4 sm:$0xff]   ;;  %v744_v20 = vld [vmem:[#allocation6 + $0x4] ss:$8 sps:$4 sm:$0xff]   ;;  %v746_v21 = vld [vmem:[#allocation6] ss:$8 sps:$4 sm:$0xff]  }
  0x3a   :  { %402 = vmatpush1.bf16.msra.mxu1 %v728_v9  ;;  %v747_v22 = vld [vmem:[#allocation6 + $0xf4] ss:$8 sps:$4 sm:$0xff]   ;;  %v749_v23 = vld [vmem:[#allocation6 + $0xf0] ss:$8 sps:$4 sm:$0xff]   ;;  %v750_v24 = vld [vmem:[#allocation6 + $0xe4] ss:$8 sps:$4 sm:$0xff]  }
  0x3b   :  { %403 = vmatprep.subr.bf16.mxu1 %v729_v10  ;;  %v752_v25 = vld [vmem:[#allocation6 + $0xe0] ss:$8 sps:$4 sm:$0xff]   ;;  %v753_v26 = vld [vmem:[#allocation6 + $0xd4] ss:$8 sps:$4 sm:$0xff]   ;;  %v755_v27 = vld [vmem:[#allocation6 + $0xd0] ss:$8 sps:$4 sm:$0xff]  }
  0x3c   :  { %v756_v28 = vld [vmem:[#allocation6 + $0xc4] ss:$8 sps:$4 sm:$0xff]   ;;  %v758_v29 = vld [vmem:[#allocation6 + $0xc0] ss:$8 sps:$4 sm:$0xff]   ;;  %v759_v30 = vld [vmem:[#allocation6 + $0xb4] ss:$8 sps:$4 sm:$0xff]  }
  0x3d   :  { %v761_v31 = vld [vmem:[#allocation6 + $0xb0] ss:$8 sps:$4 sm:$0xff]   ;;  %v762_v32 = vld [vmem:[#allocation6 + $0xa4] ss:$8 sps:$4 sm:$0xff]   ;;  %v764_v33 = vld [vmem:[#allocation6 + $0xa0] ss:$8 sps:$4 sm:$0xff]  }
  0x3e   :  { %404 = vmatpush1.bf16.msra.mxu1 %v731_v11  ;;  %v765_v34 = vld [vmem:[#allocation6 + $0x94] ss:$8 sps:$4 sm:$0xff]   ;;  %v767_v35 = vld [vmem:[#allocation6 + $0x90] ss:$8 sps:$4 sm:$0xff]   ;;  %v768_v36 = vld [vmem:[#allocation6 + $0x84] ss:$8 sps:$4 sm:$0xff]  }
  0x3f   :  { %405 = vmatprep.subr.bf16.mxu1 %v732_v12  ;;  %v770_v37 = vld [vmem:[#allocation6 + $0x80] ss:$8 sps:$4 sm:$0xff]   ;;  %v771_v38 = vld [vmem:[#allocation7 + $0x78] sm:$0xff]   ;;  %v773_v40 = vld [vmem:[#allocation7 + $0x70] sm:$0xff]   ;;  %v156_v49 = vshrl.u32 %v155_v48, 7 }
  0x40   :  { %v772_v39 = vld [vmem:[#allocation7 + $0x38] sm:$0xff]   ;;  %689 = vmatprep.subr.bf16.mxu0 %v771_v38  ;;  %v774_v41 = vld [vmem:[#allocation7 + $0x30] sm:$0xff]   ;;  %v775_v42 = vld [vmem:[#allocation7 + $0x68] sm:$0xff]  }
  0x41   :  { %690 = vmatpush3.bf16.msra.mxu0 %v772_v39  ;;  %v776_v43 = vld [vmem:[#allocation7 + $0x28] sm:$0xff]   ;;  %v777_v44 = vld [vmem:[#allocation7 + $0x60] sm:$0xff]   ;;  %v779_v46 = vld [vmem:[#allocation7 + $0x58] sm:$0xff]   ;;  %v161_v50 = vsub.s32 1, %v156_v49  ;;  %v157_v51 = vsub.s32 0, %v156_v49 }
  0x42   :  { %406 = vmatpush1.bf16.msra.mxu1 %v734_v13  ;;  %691 = vmatprep.subr.bf16.mxu0 %v773_v40  ;;  %v778_v45 = vld [vmem:[#allocation7 + $0x20] sm:$0xff]   ;;  %v780_v47 = vld [vmem:[#allocation7 + $0x18] sm:$0xff]   ;;  %v781_v5 = vld [vmem:[#allocation7 + $0x50] sm:$0xff]  }
  0x43   :  { %407 = vmatprep.subr.bf16.mxu1 %v735_v14  ;;  %v84_v52 = vld [vmem:[%s948_s2] sm:$0x3]  ;;  %v782_v6 = vld [vmem:[#allocation7 + $0x10] sm:$0xff]   ;;  %v783_v7 = vld [vmem:[#allocation7 + $0x48] sm:$0xff]  }
  0x44   :  { %v162_v54 = vrot.slane %v84_v52, %v161_v50  ;;  %v158_v55 = vrot.slane %v84_v52, %v157_v51  ;;  %v784_v8 = vld [vmem:[#allocation7 + $0x8] sm:$0xff]   ;;  %v785_v9 = vld [vmem:[#allocation7 + $0x40] sm:$0xff]  }
  0x45   :  { %692 = vmatpush3.bf16.msra.mxu0 %v774_v41  ;;  %v786_v10 = vld [vmem:[#allocation7] sm:$0xff]  }
  0x46   :  { %408 = vmatpush1.bf16.msra.mxu1 %v737_v15  ;;  %693 = vmatprep.subr.bf16.mxu0 %v775_v42  ;;  %v117_v11 = vld [vmem:[%s950_s4] sm:$0x3] }
  0x47   :  { %409 = vmatprep.subr.bf16.mxu1 %v738_v16  ;;  %v236_v13 = vrot.slane %v117_v11, %v161_v50  ;;  %v232_v14 = vrot.slane %v117_v11, %v157_v51 }
  0x49   :  { %694 = vmatpush3.bf16.msra.mxu0 %v776_v43 }
  0x4a   :  { %410 = vmatpush1.bf16.msra.mxu1 %v740_v17  ;;  %695 = vmatprep.subr.bf16.mxu0 %v777_v44 }
  0x4b   :  { %411 = vmatprep.subr.bf16.mxu1 %v741_v18 }
  0x4d   :  { %696 = vmatpush3.bf16.msra.mxu0 %v778_v45 }
  0x4e   :  { %412 = vmatpush1.bf16.msra.mxu1 %v743_v19  ;;  %697 = vmatprep.subr.bf16.mxu0 %v779_v46 }
  0x4f   :  { %413 = vmatprep.subr.bf16.mxu1 %v744_v20 }
  0x51   :  { %698 = vmatpush3.bf16.msra.mxu0 %v780_v47 }
  0x52   :  { %414 = vmatpush1.bf16.msra.mxu1 %v746_v21  ;;  %699 = vmatprep.subr.bf16.mxu0 %v781_v5 }
  0x53   :  { %415 = vmatprep.subr.bf16.mxu1 %v747_v22 }
  0x55   :  { %700 = vmatpush3.bf16.msra.mxu0 %v782_v6 }
  0x56   :  { %416 = vmatpush2.bf16.msra.mxu1 %v749_v23  ;;  %701 = vmatprep.subr.bf16.mxu0 %v783_v7 }
  0x57   :  { %417 = vmatprep.subr.bf16.mxu1 %v750_v24 }
  0x59   :  { %702 = vmatpush3.bf16.msra.mxu0 %v784_v8 }
  0x5a   :  { %418 = vmatpush2.bf16.msra.mxu1 %v752_v25  ;;  %703 = vmatprep.subr.bf16.mxu0 %v785_v9 }
  0x5b   :  { %419 = vmatprep.subr.bf16.mxu1 %v753_v26 }
  0x5d   :  { %704 = vmatpush3.bf16.msra.mxu0 %v786_v10 }
  0x5e   :  { %420 = vmatpush2.bf16.msra.mxu1 %v755_v27 }
  0x5f   :  { %421 = vmatprep.subr.bf16.mxu1 %v756_v28 }
  0x62   :  { %422 = vmatpush2.bf16.msra.mxu1 %v758_v29  ;;  %v672_v29 = vld [vmem:[%s952_s6] ss:$0 sm:$0xff] }
  0x63   :  { %423 = vmatprep.subr.bf16.mxu1 %v759_v30 }
  0x66   :  { %424 = vmatpush2.bf16.msra.mxu1 %v761_v31 }
  0x67   :  { %425 = vmatprep.subr.bf16.mxu1 %v762_v32 }
  0x6a   :  { %426 = vmatpush2.bf16.msra.mxu1 %v764_v33 }
  0x6b   :  { %427 = vmatprep.subr.bf16.mxu1 %v765_v34 }
  0x6e   :  { %428 = vmatpush2.bf16.msra.mxu1 %v767_v35 }
  0x6f   :  { %429 = vmatprep.subr.bf16.mxu1 %v768_v36 }
  0x72   :  { %430 = vmatpush2.bf16.msra.mxu1 %v770_v37 }
  0xf8   :  { %v213_v53 = vpop.f32.mrf.mxu0 }
  0xf9   :  { %v214_v60 = vadd.f32 %v213_v53, %v158_v55 }
  0xfa   :  { %v215_v56 = vpop.f32.mrf.mxu0 }
  0xfb   :  { %v216_v58 = vadd.f32 %v215_v56, %v162_v54  ;;  %v222_v2 = vmax.f32 %v214_v60, 0.0 }
  0xfc   :  { %v217_v57 = vpop.f32.mrf.mxu0 }
  0xfd   :  { %v218_v59 = vadd.f32 %v217_v57, %v158_v55  ;;  %v223_v0 = vmax.f32 %v216_v58, 0.0 }
  0xfe   :  { %v219_v61 = vpop.f32.mrf.mxu0 }
  0xff   :  { %v220_v62 = vadd.f32 %v219_v61, %v162_v54  ;;  %v224_v63 = vmax.f32 %v218_v59, 0.0 }
 0x101   :  { %v225_v1 = vmax.f32 %v220_v62, 0.0  ;;  %v226_v4 = vpack.c.bf16 %v224_v63, %v222_v2 }
 0x103   :  { %v227_v3 = vpack.c.bf16 %v225_v1, %v223_v0 }
 0x105   :  { %431 = vmatprep.mubr.bf16.mxu1 %v227_v3 }
 0x106   :  { %432 = vmatmul.mubr.bf16.vlgmr.msra.gmra.mxu1 %v226_v4 }
 0x1c6   :  { %v433_v12 = vpop.f32.mrf.mxu1 }
 0x1c7   :  { %v434_v19 = vadd.f32 %v433_v12, %v232_v14 }
 0x1c8   :  { %v435_v15 = vpop.f32.mrf.mxu1 }
 0x1c9   :  { %v436_v17 = vadd.f32 %v435_v15, %v236_v13  ;;  %v442_v25 = vmax.f32 %v434_v19, 0.0 }
 0x1ca   :  { %v437_v16 = vpop.f32.mrf.mxu1 }
 0x1cb   :  { %v438_v18 = vadd.f32 %v437_v16, %v232_v14  ;;  %v443_v23 = vmax.f32 %v436_v17, 0.0 }
 0x1cc   :  { %v439_v20 = vpop.f32.mrf.mxu1 }
 0x1cd   :  { %v440_v21 = vadd.f32 %v439_v20, %v236_v13  ;;  %v444_v22 = vmax.f32 %v438_v18, 0.0 }
 0x1cf   :  { %v445_v24 = vmax.f32 %v440_v21, 0.0  ;;  %v446_v27 = vpack.c.bf16 %v444_v22, %v442_v25 }
 0x1d1   :  { %v447_v26 = vpack.c.bf16 %v445_v24, %v443_v23 }
 0x1d3   :  { %582 = vmatprep.mubr.bf16.mxu0 %v447_v26 }
 0x1d4   :  { %583 = vmatmul.mubr.bf16.vlgmr.msra.gmra.mxu0 %v446_v27 }
 0x294   :  { %v705_v28 = vpop.f32.mrf.mxu0 }
 0x296   :  { %v706_v30 = vpop.f32.mrf.mxu0 }
 0x297   :  { %v707_v31 = vadd.f32 %v706_v30, %v705_v28 }
 0x298   :  { %v708_v32 = vpop.f32.mrf.mxu0 }
 0x299   :  { %v585_v33 = vadd.f32 %v707_v31, %v672_v29 }
 0x29a   :  { %v709_v34 = vpop.f32.mrf.mxu0 }
 0x29b   :  { %624 = vst [vmem:[%s953_s7] sm:$0xff] %v585_v33 }
 0x29c   :  { %630 = vsyncpa [#allocation3], 1 }
 0x29d   :  { %631 = vsyncpa [#allocation5], 1 }
 0x29e   :  { %632 = vsyncpa [#allocation8], 1 }

</bundles_post_ra>
